<compile_context>
chip_gen: v6e
topology: v6e:2x2x1
jax: 0.10.0
libtpu: 0.0.40
codegen_flags: <defaults>
</compile_context>

<pallas_src>
import jax
import jax.numpy as jnp
from jax.experimental import pallas as pl
from jax.experimental.pallas import tpu as pltpu

K = 3  # MaxPool2d kernel_size == stride (PyTorch default), padding=0


def _pool_h(x_ref, n_rows):
    """Pool along H: rows sit on the sublane axis, so the three pooling phases
    are sublane-strided ref loads folded pairwise on the VPU (no temporaries
    kept live beyond the running maximum)."""
    return jnp.maximum(
        jnp.maximum(x_ref[:, pl.ds(0, n_rows, stride=K), :],
                    x_ref[:, pl.ds(1, n_rows, stride=K), :]),
        x_ref[:, pl.ds(2, n_rows, stride=K), :])


def _maxpool3_kernel_xpose(x_ref, o_ref, t_ref):
    """x_ref: (Ct, Ht, W) VMEM tile (batch dim squeezed).
       o_ref: (Ct, Ht//3, Wo) VMEM tile.
       t_ref: (Ct, W, Ht//3) VMEM scratch holding the H-pooled tile transposed,
              so the W reduction can also use sublane-strided loads (lane-
              strided loads/slices do not lower on Mosaic)."""
    ct, ho_t, wo = o_ref.shape
    mh = _pool_h(x_ref, ho_t)                       # (Ct, Ho_t, W)
    # Move W to the sublane axis (minor-dim transpose -> XLU, otherwise idle).
    t_ref[...] = jnp.swapaxes(mh, 1, 2)             # (Ct, W, Ho_t)
    mw = jnp.maximum(
        jnp.maximum(t_ref[:, pl.ds(0, wo, stride=K), :],
                    t_ref[:, pl.ds(1, wo, stride=K), :]),
        t_ref[:, pl.ds(2, wo, stride=K), :])        # (Ct, Wo, Ho_t)
    o_ref[...] = jnp.swapaxes(mw, 1, 2)             # one dense store per tile


def _maxpool3_kernel_reshape(x_ref, o_ref):
    """Proven fallback: W reduction via minor-dim split reshape + reduce.
    Slower (padded lane relayout) but known to lower for any shape."""
    ct, ho_t, wo = o_ref.shape
    mh = _pool_h(x_ref, ho_t)                       # (Ct, Ho_t, W)
    o_ref[...] = jnp.max(mh[:, :, : K * wo].reshape(ct, ho_t, wo, K), axis=-1)


def _rup(v, m):
    return -(-v // m) * m


def _pooled_call(shape, dtype, use_xpose):
    """Plan the tiling for one kernel variant and return the pallas_call."""
    n, c, h, w = shape
    ho, wo = h // K, w // K
    isz = jnp.dtype(dtype).itemsize

    # ---- per-generation scoped-VMEM budget ---------------------------------
    try:
        phys = int(pltpu.get_tpu_info().vmem_capacity_bytes)
    except Exception:
        phys = 64 * 1024 * 1024                      # conservative: v7x physical
    # v5e/v6e (128 MiB) -> 96 MiB limit; v7x (64 MiB) -> 48 MiB limit.
    vmem_limit = max(32 * 1024 * 1024,
                     min(phys * 3 // 4, 96 * 1024 * 1024))
    budget = int(vmem_limit * 0.8)                   # headroom for compiler scratch

    def block_bytes(ct, ht):
        """VMEM per grid step: double-buffered in/out blocks + scratch + live
        intermediates, with (8,128) layout padding on the minor dims."""
        ho_t = max(1, ht // K)
        inb = ct * _rup(ht, 8) * _rup(w, 128) * isz
        outb = ct * _rup(ho_t, 8) * _rup(wo, 128) * isz
        mhb = ct * _rup(ho_t, 8) * _rup(w, 128) * isz
        if use_xpose:
            scrb = ct * _rup(w, 8) * _rup(ho_t, 128) * isz
            extra = 2 * scrb                         # scratch + transposed value
        else:
            # (.., wo, 3) intermediate: lane dim 3 pads to 128.
            extra = ct * ho_t * _rup(wo, 8) * 128 * isz
        return 2 * inb + 2 * outb + mhb + extra

    # ---- spatial tile: full H unless a single channel alone blows the budget
    h_tile = h
    if block_bytes(1, h_tile) > budget and h >= 48:
        ht = (h // 24) * 24
        while ht > 24 and block_bytes(1, ht) > budget:
            ht = max(24, (ht // 2 // 24) * 24)
        h_tile = min(h, ht)
    ho_t = max(1, h_tile // K)

    # ---- channel tile: as many channels as fit the budget ------------------
    c_tile = int(max(1, min(c, budget // max(1, block_bytes(1, h_tile)))))

    # ---- v7x megacore: make sure there are >= 2 "parallel" grid steps ------
    steps = n * pl.cdiv(c, c_tile) * pl.cdiv(ho, ho_t)
    if steps < 2 and c > 1:
        c_tile = -(-c // 2)                          # ceil(c / 2)

    grid = (n, pl.cdiv(c, c_tile), pl.cdiv(ho, ho_t))
    kernel = _maxpool3_kernel_xpose if use_xpose else _maxpool3_kernel_reshape
    scratch = [pltpu.VMEM((c_tile, w, ho_t), dtype)] if use_xpose else []

    return pl.pallas_call(
        kernel,
        out_shape=jax.ShapeDtypeStruct((n, c, ho, wo), dtype),
        grid=grid,
        in_specs=[
            # Block last two dims are either full (h, w) or (mult-of-8, full w),
            # satisfying the TPU tiling rule; batch squeezed, channels/rows tiled.
            pl.BlockSpec((None, c_tile, h_tile, w), lambda i, j, k: (i, j, k, 0)),
        ],
        out_specs=pl.BlockSpec((None, c_tile, ho_t, wo),
                               lambda i, j, k: (i, j, k, 0)),
        scratch_shapes=scratch,
        compiler_params=pltpu.CompilerParams(
            dimension_semantics=("parallel", "parallel", "parallel"),
            vmem_limit_bytes=int(vmem_limit),
        ),
    )


def tudui2_forward(x_nchw):
    """Tudui2.forward: MaxPool2d(kernel_size=3, ceil_mode=False) on NCHW input.

    x_nchw: (N, C, H, W)  ->  (N, C, H // 3, W // 3)
    """
    n, c, h, w = x_nchw.shape
    if h < K or w < K:
        raise ValueError("MaxPool2d(kernel_size=3, ceil_mode=False) needs H, W >= 3")
    try:
        out = _pooled_call(x_nchw.shape, x_nchw.dtype, use_xpose=True)(x_nchw)
        # Block inside the try so any Mosaic lowering/compile error is caught
        # here and we can fall back to the proven formulation.
        return jax.block_until_ready(out)
    except Exception:
        return _pooled_call(x_nchw.shape, x_nchw.dtype, use_xpose=False)(x_nchw)


def _reference(x):
    n, c, h, w = x.shape
    ho, wo = h // K, w // K
    return jnp.max(x[:, :, : ho * K, : wo * K].reshape(n, c, ho, K, wo, K),
                   axis=(3, 5))


if __name__ == "__main__":
    key = jax.random.PRNGKey(0)

    # Small NCHW conv-style input.
    N, C, H, W = 2, 4, 16, 16
    x = jax.random.normal(key, (N, C, H, W), dtype=jnp.float32)
    out = jax.block_until_ready(tudui2_forward(x))
    assert out.shape == (N, C, H // K, W // K), out.shape
    assert jnp.allclose(out, _reference(x)), "mismatch vs reference maxpool"

    # Ragged case: N == 1 (forces a 2-way channel split for the dual-TC rule,
    # so C % c_tile != 0), plus leftover rows/cols (17 % 3, 19 % 3 != 0).
    x2 = jax.random.normal(jax.random.PRNGKey(0), (1, 5, 17, 19), dtype=jnp.float32)
    out2 = jax.block_until_ready(tudui2_forward(x2))
    assert out2.shape == (1, 5, 17 // K, 19 // K), out2.shape
    assert jnp.allclose(out2, _reference(x2)), "mismatch vs reference maxpool (ragged)"

    print("KERNEL_OK")
</pallas_src>

<mosaic_0001>
module attributes {stable_mosaic.version = 11 : i64} {
  func.func @_maxpool3_kernel_xpose(%arg0: i32, %arg1: i32, %arg2: i32, %arg3: memref<1x4x16x16xf32, #tpu.memory_space<vmem>>, %arg4: memref<1x4x5x5xf32, #tpu.memory_space<vmem>>, %arg5: memref<4x16x5xf32, #tpu.memory_space<vmem>>) attributes {dimension_semantics = [#tpu.dimension_semantics<parallel>, #tpu.dimension_semantics<parallel>, #tpu.dimension_semantics<parallel>], iteration_bounds = array<i64: 2, 1, 1>, scalar_prefetch = 0 : i64, scratch_operands = 1 : i64, tpu.core_type = #tpu.core_type<tc>, window_params = [{transform_indices = @transform_0, window_bounds = array<i64: 1, 4, 16, 16>}, {transform_indices = @transform_1, window_bounds = array<i64: 1, 4, 5, 5>}]} {
    %c0 = arith.constant 0 : index
    %c0_0 = arith.constant 0 : index
    %c0_1 = arith.constant 0 : index
    %c0_2 = arith.constant 0 : index
    %0 = tpu.strided_load %arg3[%c0, %c0_0, %c0_1, %c0_2] {strides = array<i32: 1, 1, 3, 1>} : memref<1x4x16x16xf32, #tpu.memory_space<vmem>>, vector<1x4x5x16xf32>
    %1 = vector.shape_cast %0 : vector<1x4x5x16xf32> to vector<4x5x16xf32>
    %c0_3 = arith.constant 0 : index
    %c0_4 = arith.constant 0 : index
    %c1 = arith.constant 1 : index
    %c0_5 = arith.constant 0 : index
    %2 = tpu.strided_load %arg3[%c0_3, %c0_4, %c1, %c0_5] {strides = array<i32: 1, 1, 3, 1>} : memref<1x4x16x16xf32, #tpu.memory_space<vmem>>, vector<1x4x5x16xf32>
    %3 = vector.shape_cast %2 : vector<1x4x5x16xf32> to vector<4x5x16xf32>
    %4 = arith.maximumf %1, %3 : vector<4x5x16xf32>
    %c0_6 = arith.constant 0 : index
    %c0_7 = arith.constant 0 : index
    %c2 = arith.constant 2 : index
    %c0_8 = arith.constant 0 : index
    %5 = tpu.strided_load %arg3[%c0_6, %c0_7, %c2, %c0_8] {strides = array<i32: 1, 1, 3, 1>} : memref<1x4x16x16xf32, #tpu.memory_space<vmem>>, vector<1x4x5x16xf32>
    %6 = vector.shape_cast %5 : vector<1x4x5x16xf32> to vector<4x5x16xf32>
    %7 = arith.maximumf %4, %6 : vector<4x5x16xf32>
    %8 = tpu.transpose %7, [0, 2, 1] : vector<4x5x16xf32> -> vector<4x16x5xf32>
    %c0_9 = arith.constant 0 : index
    %c0_10 = arith.constant 0 : index
    %c0_11 = arith.constant 0 : index
    %9 = vector.load %arg5[%c0_9, %c0_10, %c0_11] : memref<4x16x5xf32, #tpu.memory_space<vmem>>, vector<4x16x5xf32>
    tpu.vector_store %arg5[%c0_9, %c0_10, %c0_11], %8 {strides = array<i32>} : memref<4x16x5xf32, #tpu.memory_space<vmem>>, vector<4x16x5xf32>,
    %c0_12 = arith.constant 0 : index
    %c0_13 = arith.constant 0 : index
    %c0_14 = arith.constant 0 : index
    %10 = tpu.strided_load %arg5[%c0_12, %c0_13, %c0_14] {strides = array<i32: 1, 3, 1>} : memref<4x16x5xf32, #tpu.memory_space<vmem>>, vector<4x5x5xf32>
    %c0_15 = arith.constant 0 : index
    %c1_16 = arith.constant 1 : index
    %c0_17 = arith.constant 0 : index
    %11 = tpu.strided_load %arg5[%c0_15, %c1_16, %c0_17] {strides = array<i32: 1, 3, 1>} : memref<4x16x5xf32, #tpu.memory_space<vmem>>, vector<4x5x5xf32>
    %12 = arith.maximumf %10, %11 : vector<4x5x5xf32>
    %c0_18 = arith.constant 0 : index
    %c2_19 = arith.constant 2 : index
    %c0_20 = arith.constant 0 : index
    %13 = tpu.strided_load %arg5[%c0_18, %c2_19, %c0_20] {strides = array<i32: 1, 3, 1>} : memref<4x16x5xf32, #tpu.memory_space<vmem>>, vector<4x5x5xf32>
    %14 = arith.maximumf %12, %13 : vector<4x5x5xf32>
    %15 = tpu.transpose %14, [0, 2, 1] : vector<4x5x5xf32> -> vector<4x5x5xf32>
    %c0_21 = arith.constant 0 : index
    %c0_22 = arith.constant 0 : index
    %c0_23 = arith.constant 0 : index
    %c0_24 = arith.constant 0 : index
    %16 = vector.load %arg4[%c0_21, %c0_22, %c0_23, %c0_24] : memref<1x4x5x5xf32, #tpu.memory_space<vmem>>, vector<1x4x5x5xf32>
    %17 = vector.shape_cast %16 : vector<1x4x5x5xf32> to vector<4x5x5xf32>
    %18 = vector.shape_cast %15 : vector<4x5x5xf32> to vector<1x4x5x5xf32>
    tpu.vector_store %arg4[%c0_21, %c0_22, %c0_23, %c0_24], %18 {strides = array<i32>} : memref<1x4x5x5xf32, #tpu.memory_space<vmem>>, vector<1x4x5x5xf32>,
    return
  }
  func.func @transform_0(%arg0: i32, %arg1: i32, %arg2: i32) -> (i32, i32, i32, i32) {
    %c0_i32 = arith.constant 0 : i32
    %c0_i32_0 = arith.constant 0 : i32
    return %arg0, %arg1, %arg2, %c0_i32 : i32, i32, i32, i32
  }
  func.func @transform_1(%arg0: i32, %arg1: i32, %arg2: i32) -> (i32, i32, i32, i32) {
    %c0_i32 = arith.constant 0 : i32
    %c0_i32_0 = arith.constant 0 : i32
    return %arg0, %arg1, %arg2, %c0_i32 : i32, i32, i32, i32
  }
}

module attributes {stable_mosaic.version = 11 : i64} {
  func.func @_maxpool3_kernel_reshape(%arg0: i32, %arg1: i32, %arg2: i32, %arg3: memref<1x4x16x16xf32, #tpu.memory_space<vmem>>, %arg4: memref<1x4x5x5xf32, #tpu.memory_space<vmem>>) attributes {dimension_semantics = [#tpu.dimension_semantics<parallel>, #tpu.dimension_semantics<parallel>, #tpu.dimension_semantics<parallel>], iteration_bounds = array<i64: 2, 1, 1>, scalar_prefetch = 0 : i64, scratch_operands = 0 : i64, tpu.core_type = #tpu.core_type<tc>, window_params = [{transform_indices = @transform_0, window_bounds = array<i64: 1, 4, 16, 16>}, {transform_indices = @transform_1, window_bounds = array<i64: 1, 4, 5, 5>}]} {
    %c0 = arith.constant 0 : index
    %c0_0 = arith.constant 0 : index
    %c0_1 = arith.constant 0 : index
    %c0_2 = arith.constant 0 : index
    %0 = tpu.strided_load %arg3[%c0, %c0_0, %c0_1, %c0_2] {strides = array<i32: 1, 1, 3, 1>} : memref<1x4x16x16xf32, #tpu.memory_space<vmem>>, vector<1x4x5x16xf32>
    %1 = vector.shape_cast %0 : vector<1x4x5x16xf32> to vector<4x5x16xf32>
    %c0_3 = arith.constant 0 : index
    %c0_4 = arith.constant 0 : index
    %c1 = arith.constant 1 : index
    %c0_5 = arith.constant 0 : index
    %2 = tpu.strided_load %arg3[%c0_3, %c0_4, %c1, %c0_5] {strides = array<i32: 1, 1, 3, 1>} : memref<1x4x16x16xf32, #tpu.memory_space<vmem>>, vector<1x4x5x16xf32>
    %3 = vector.shape_cast %2 : vector<1x4x5x16xf32> to vector<4x5x16xf32>
    %4 = arith.maximumf %1, %3 : vector<4x5x16xf32>
    %c0_6 = arith.constant 0 : index
    %c0_7 = arith.constant 0 : index
    %c2 = arith.constant 2 : index
    %c0_8 = arith.constant 0 : index
    %5 = tpu.strided_load %arg3[%c0_6, %c0_7, %c2, %c0_8] {strides = array<i32: 1, 1, 3, 1>} : memref<1x4x16x16xf32, #tpu.memory_space<vmem>>, vector<1x4x5x16xf32>
    %6 = vector.shape_cast %5 : vector<1x4x5x16xf32> to vector<4x5x16xf32>
    %7 = arith.maximumf %4, %6 : vector<4x5x16xf32>
    %8 = vector.extract_strided_slice %7 {offsets = [0, 0, 0], sizes = [4, 5, 15], strides = [1, 1, 1]} : vector<4x5x16xf32> to vector<4x5x15xf32>
    %9 = vector.shape_cast %8 : vector<4x5x15xf32> to vector<4x5x5x3xf32>
    %cst = arith.constant dense<0xFF800000> : vector<4x5x5xf32>
    %10 = vector.multi_reduction <maximumf>, %9, %cst [3] : vector<4x5x5x3xf32> to vector<4x5x5xf32>
    %c0_9 = arith.constant 0 : index
    %c0_10 = arith.constant 0 : index
    %c0_11 = arith.constant 0 : index
    %c0_12 = arith.constant 0 : index
    %11 = vector.load %arg4[%c0_9, %c0_10, %c0_11, %c0_12] : memref<1x4x5x5xf32, #tpu.memory_space<vmem>>, vector<1x4x5x5xf32>
    %12 = vector.shape_cast %11 : vector<1x4x5x5xf32> to vector<4x5x5xf32>
    %13 = vector.shape_cast %10 : vector<4x5x5xf32> to vector<1x4x5x5xf32>
    tpu.vector_store %arg4[%c0_9, %c0_10, %c0_11, %c0_12], %13 {strides = array<i32>} : memref<1x4x5x5xf32, #tpu.memory_space<vmem>>, vector<1x4x5x5xf32>,
    return
  }
  func.func @transform_0(%arg0: i32, %arg1: i32, %arg2: i32) -> (i32, i32, i32, i32) {
    %c0_i32 = arith.constant 0 : i32
    %c0_i32_0 = arith.constant 0 : i32
    return %arg0, %arg1, %arg2, %c0_i32 : i32, i32, i32, i32
  }
  func.func @transform_1(%arg0: i32, %arg1: i32, %arg2: i32) -> (i32, i32, i32, i32) {
    %c0_i32 = arith.constant 0 : i32
    %c0_i32_0 = arith.constant 0 : i32
    return %arg0, %arg1, %arg2, %c0_i32 : i32, i32, i32, i32
  }
}

</mosaic_0001>

<bundles_post_ra>
// kernel: tpu_custom_call.1
= control target key start
LH: loop header
LB: loop body
LE: loop exit
PB: predicated region body
PF: predicated region fallthrough
CT: control target
= control target key end

     0   :  { %6 = vsyncpa [#allocation4], 0  ;;  %s909_s0 = inlined_call_operand.hbm [shape: f32[2,4,16,16], index: 0, kind: input, shape index: {}]   ;;  %s910_s1 = inlined_call_operand.vmem [shape: f32[2,4,5,5], index: 1, kind: output, shape index: {}]  }
   0x1   :  { %8 = vsyncpa [#allocation4 + $0x1], 0  ;;  %s805_s6 = smov 0   ;;  %s807_s7 = smov 0  }
   0x2   :  { %s809_s8 = smov 0   ;;  %s811_s9 = smov 0  }
   0x3   :  { %s813_s10 = smov 0   ;;  %s815_s11 = smov 0  }
   0x4 LB: > { %s628_s12 = sadd.s32 4294967295, %s790_s11   ;;  %s33_s13 = sadd.s32 1, %s786_s10  ;;  %s790_s11 = sphi %s815_s11, %s14_s11   ;;  %s786_s10 = sphi %s813_s10, %s918_s10   ;;  %s782_s9 = sphi %s811_s9, %s917_s9   ;;  %s778_s8 = sphi %s809_s8, %s916_s8   ;;  %s774_s7 = sphi %s807_s7, %s915_s7   ;;  %s770_s6 = sphi %s805_s6, %s914_s6  }
   0x5   : > { %p35_p0 = scmp.ge.s32.totalorder %s33_s13, 2  ;;  %s44_s14 = sadd.s32 1, %s778_s8 }
   0x6   : > { %p51_p1 = scmp.ne.s32.totalorder %s778_s8, %s774_s7  ;;  %p52_p2 = scmp.eq.s32.totalorder %s790_s11, 0 }
   0x7   : > { %s920_s13 = smov (%p35_p0, %s33_s13), 0  ;;  %p57_p4 = scmp.ne.s32.totalorder %s774_s7, %s770_s6 }
   0x8   : > { %p841_p3 = por %p52_p2, %p51_p1  ;;  %s37_s16 = ssub.s32 %s786_s10, %s920_s13 }
   0x9   : > { %p58_p5 = scmp.eq.s32.totalorder %s628_s12, 0  ;;  %p42_p6 = scmp.eq.s32.totalorder %s37_s16, 0 }
   0xa   : > { %p660_p8 = scmp.lt.s32.totalorder %s790_s11, 2  ;;  %s111_s19 = sand.u32 1, %s778_s8  }
   0xb   : > { %p848_p7 = por %p58_p5, %p57_p4  ;;  %s652_s20 = sshll.u32 %s786_s10, 10 }
   0xc   : > { %s854_s18 = scalar_select %p42_p6, %s778_s8, %s44_s14  }
   0xd   : > { %s632_s21 = sshll.u32 %s111_s19, 6  ;;  %s126_s24 = scalar_lea.hbm %s909_s0, %s652_s20 }
   0xe   : > { %s115_s25 = scalar_lea.vmem [#allocation3], %s632_s21  ;;  %p863_p9 = pnand %p660_p8, %p841_p3 }
   0xf   : > { %s127_s26 = sshll.u32 %s115_s25, 4  ;;  %s112_s28 = scalar_lea.sflag [#allocation4], %s111_s19  ;;  %s128_s26 = int_to_ptr.vmem [resolvable:$true] %s127_s26 }
  0x10   : > { %p714_p10 = pneg %p863_p9  ;;  %s725_s29 = scalar_lea.vmem %s128_s26, 1024 }
  0x11   : > { %p726_p11 = scmp.ne.s32.totalorder %s128_s26, %s725_s29  ;;  %s792_s30 = smov [#allocation3]  }
  0x12   : > { %s730_s2 = sshll.u32 %s792_s30, 4  ;;  %s731_s2 = int_to_ptr.vmem [resolvable:$false] %s730_s2 }
  0x13   : > { %p728_p12 = pnand %p726_p11, %p714_p10  ;;  %s732_s3 = scalar_lea.vmem %s731_s2, 2048 }
  0x14   : > { %p733_p0 = scmp.lt.s32.totalorder %s128_s26, %s731_s2  ;;  %p734_p1 = scmp.lt.s32.totalorder %s732_s3, %s725_s29 }
  0x15   : > { %p729_p13 = pneg %p728_p12 }
  0x16   : > { %p735_p2 = por %p734_p1, %p733_p0 }
  0x18   : > { %p736_p3 = pnand %p735_p2, %p729_p13 }
  0x1a   : > { %739 = shalt.err (!%p736_p3)
}
  0x1b   : > { %s793_s4 = smov 128   ;;  %s794_s5 = smov 8  }
  0x1c   : > { %659 = dma.hbm_to_vmem [thread:$0]  (!%p863_p9), %s126_s24, 1024, %s128_s26, %s112_s28, %s793_s4, %s793_s4, %s794_s5  }
  0x1d   : > { %p635_p4 = scmp.ge.s32.totalorder %s790_s11, 1  ;;  %p135_p5 = scmp.lt.s32.totalorder %s790_s11, 3 }
  0x1f   : > { %p136_p6 = pnand %p635_p4, %p135_p5 }
  0x20   : > { %s141_s6 = sand.u32 (!%p136_p6), 1, %s774_s7  }
  0x21   : > { %139 = sbr.rel (%p136_p6) target bundleno = 325 (0x145), region = 24  ;;  %s636_s12 = sshll.u32 (!%p136_p6), %s141_s6, 6 }
  0x22   : > { %s142_s14 = scalar_lea.sflag (!%p136_p6), [#allocation4], %s141_s6  ;;  %s145_s15 = scalar_lea.vmem (!%p136_p6), [#allocation3], %s636_s12 }
  0x26   : > { %765 = dma.done.wait (%p848_p7), %s142_s14, 1024  }
  0x27   : > { %767 = vsyncadd (%p848_p7), %s142_s14, 4294966272  ;;  %v640_v0 = vld [vmem:[%s145_s15 + $0x20] ss:$3 sm:$0x1f]  ;;  %vm345_vm0 = vcmask 39936   ;;  %p174_p7 = scmp.lt.s32.totalorder %s782_s9, 1 }
  0x28   : > { %v644_v1 = vld [vmem:[%s145_s15 + $0x21] ss:$3 sm:$0x1f]  ;;  %v648_v3 = vld [vmem:[%s145_s15 + $0x22] ss:$3 sm:$0x1f] }
  0x29   : > { %v203_v2 = vmax.f32 %v640_v0, %v644_v1  ;;  %v186_v4 = vld [vmem:[%s145_s15] ss:$3 sm:$0x1f]  ;;  %v642_v5 = vld [vmem:[%s145_s15 + $0x1] ss:$3 sm:$0x1f] }
  0x2a   : > { %v646_v6 = vld [vmem:[%s145_s15 + $0x2] ss:$3 sm:$0x1f]  ;;  %v201_v8 = vmax.f32 %v186_v4, %v642_v5  ;;  %v641_v9 = vld [vmem:[%s145_s15 + $0x30] ss:$3 sm:$0x1f] }
  0x2b   : > { %v215_v7 = vmax.f32 %v203_v2, %v648_v3  ;;  %v645_v10 = vld [vmem:[%s145_s15 + $0x31] ss:$3 sm:$0x1f]  ;;  %v649_v12 = vld [vmem:[%s145_s15 + $0x32] ss:$3 sm:$0x1f] }
  0x2c   : > { %v204_v11 = vmax.f32 %v641_v9, %v645_v10  ;;  %v639_v13 = vld [vmem:[%s145_s15 + $0x10] ss:$3 sm:$0x1f]  ;;  %v213_v14 = vmax.f32 %v201_v8, %v646_v6  ;;  %v643_v15 = vld [vmem:[%s145_s15 + $0x11] ss:$3 sm:$0x1f] }
  0x2d   : > { %281 = vxpose.xlu1.b32.start.end [1/1] (short) (narrow) %v215_v7, 16  ;;  %v202_v17 = vmax.f32 %v639_v13, %v643_v15  ;;  %v647_v18 = vld [vmem:[%s145_s15 + $0x12] ss:$3 sm:$0x1f]  ;;  %s922_s9 = smov (!%p174_p7, %s782_s9), 1  ;;  %vm513_vm1 = vcmask 36864  }
  0x2e   : > { %v216_v16 = vmax.f32 %v204_v11, %v649_v12  ;;  %217 = vxpose.xlu0.b32.start.end [1/1] (short) (narrow) %v213_v14, 16  ;;  %s653_s16 = sshll.u32 %s922_s9, 5 }
  0x2f   : > { %v214_v19 = vmax.f32 %v202_v17, %v647_v18  ;;  %s184_s20 = scalar_lea.vmem %s910_s1, %s653_s16 }
  0x32   : > { %313 = vxpose.xlu1.b32.start.end [1/1] (short) (narrow) %v216_v16, 16 }
  0x33   : > { %249 = vxpose.xlu0.b32.start.end [1/1] (short) (narrow) %v214_v19, 16 }
  0xa9   : > { %v297_v20 = vpop.trf.xlu1 }
  0xaa   : > { %350 = vst.msk [vmem:[#allocation2 + $0x20] sm:$0xff] %vm345_vm0, %v297_v20  ;;  %v233_v21 = vpop.trf.xlu0 }
  0xab   : > { %346 = vst.msk [vmem:[#allocation2] sm:$0xff] %vm345_vm0, %v233_v21 }
  0xad   : > { %v298_v22 = vpop.trf.xlu1 }
  0xae   : > { %351 = vst.msk [vmem:[#allocation2 + $0x28] sm:$0xff] %vm345_vm0, %v298_v22  ;;  %v234_v23 = vpop.trf.xlu0 }
  0xaf   : > { %347 = vst.msk [vmem:[#allocation2 + $0x8] sm:$0xff] %vm345_vm0, %v234_v23 }
  0xb1   : > { %v329_v24 = vpop.trf.xlu1 }
  0xb2   : > { %352 = vst.msk [vmem:[#allocation2 + $0x30] sm:$0xff] %vm345_vm0, %v329_v24  ;;  %v265_v25 = vpop.trf.xlu0 }
  0xb3   : > { %348 = vst.msk [vmem:[#allocation2 + $0x10] sm:$0xff] %vm345_vm0, %v265_v25 }
  0xb5   : > { %v330_v26 = vpop.trf.xlu1  ;;  %v358_v27 = vld [vmem:[#allocation2 + $0x20] ss:$3 sm:$0x1f]  ;;  %v366_v28 = vld [vmem:[#allocation2 + $0x21] ss:$3 sm:$0x1f] }
  0xb6   : > { %353 = vst.msk [vmem:[#allocation2 + $0x38] sm:$0xff] %vm345_vm0, %v330_v26  ;;  %v266_v29 = vpop.trf.xlu0  ;;  %v354_v30 = vld [vmem:[#allocation2] ss:$3 sm:$0x1f]  ;;  %v371_v35 = vmax.f32 %v358_v27, %v366_v28 }
  0xb7   : > { %v362_v31 = vld [vmem:[#allocation2 + $0x1] ss:$3 sm:$0x1f]  ;;  %349 = vst.msk [vmem:[#allocation2 + $0x18] sm:$0xff] %vm345_vm0, %v266_v29 }
  0xb8   : > { %v369_v32 = vmax.f32 %v354_v30, %v362_v31  ;;  %v374_v33 = vld [vmem:[#allocation2 + $0x2] ss:$3 sm:$0x1f] }
  0xb9   : > { %v378_v36 = vld [vmem:[#allocation2 + $0x22] ss:$3 sm:$0x1f] }
  0xba   : > { %v381_v34 = vmax.f32 %v369_v32, %v374_v33  ;;  %v383_v37 = vmax.f32 %v371_v35, %v378_v36 }
  0xbc   : > { %385 = vxpose.xlu0.b32.start.end [1/1] (short) (narrow) %v381_v34, 8 }
  0xbd   : > { %v360_v38 = vld [vmem:[#allocation2 + $0x30] ss:$3 sm:$0x1f]  ;;  %v368_v39 = vld [vmem:[#allocation2 + $0x31] ss:$3 sm:$0x1f] }
  0xbe   : > { %v356_v40 = vld [vmem:[#allocation2 + $0x10] ss:$3 sm:$0x1f]  ;;  %v364_v41 = vld [vmem:[#allocation2 + $0x11] ss:$3 sm:$0x1f]  ;;  %v372_v45 = vmax.f32 %v360_v38, %v368_v39 }
  0xbf   : > { %v370_v42 = vmax.f32 %v356_v40, %v364_v41  ;;  %v376_v43 = vld [vmem:[#allocation2 + $0x12] ss:$3 sm:$0x1f] }
  0xc0   : > { %449 = vxpose.xlu0.b32.start.end [1/1] (short) (narrow) %v383_v37, 8  ;;  %v380_v46 = vld [vmem:[#allocation2 + $0x32] ss:$3 sm:$0x1f] }
  0xc1   : > { %v382_v44 = vmax.f32 %v370_v42, %v376_v43  ;;  %v384_v47 = vmax.f32 %v372_v45, %v380_v46 }
  0xc3   : > { %417 = vxpose.xlu1.b32.start.end [1/1] (short) (narrow) %v382_v44, 8 }
  0xc7   : > { %481 = vxpose.xlu1.b32.start.end [1/1] (short) (narrow) %v384_v47, 8 }
 0x138   : > { %v401_v48 = vpop.trf.xlu0 }
 0x139   : > { %514 = vst.msk [vmem:[%s184_s20] sm:$0x1f] %vm513_vm1, %v401_v48 }
 0x13c   : > { %v465_v49 = vpop.trf.xlu0 }
 0x13d   : > { %516 = vst.msk [vmem:[%s184_s20 + $0x10] sm:$0x1f] %vm513_vm1, %v465_v49 }
 0x13f   : > { %v433_v50 = vpop.trf.xlu1 }
 0x140   : > { %515 = vst.msk [vmem:[%s184_s20 + $0x8] sm:$0x1f] %vm513_vm1, %v433_v50 }
 0x143   : > { %v497_v51 = vpop.trf.xlu1 }
 0x144   : > { %517 = vst.msk [vmem:[%s184_s20 + $0x18] sm:$0x1f] %vm513_vm1, %v497_v51 }
 0x145 PF: > { %s14_s11 = sadd.s32 1, %s790_s11   ;;  %s914_s6 = smov %s774_s7 }
 0x146   : > { %p11_p8 = scmp.ge.s32.totalorder %s14_s11, 4   ;;  %s915_s7 = smov %s778_s8 }
 0x147   : > { %s916_s8 = smov %s854_s18  ;;  %s917_s9 = smov %s786_s10 }
 0x148   : > { %s918_s10 = smov %s920_s13  ;;  %13 = sbr.rel (!%p11_p8) target bundleno = 4 (0x4), region = 86 }
 0x14d   :  { %554 = vsyncpa [#allocation4], 1 }
 0x14e   :  { %556 = vsyncpa [#allocation4 + $0x1], 1 }

// kernel: tpu_custom_call.1
= control target key start
LH: loop header
LB: loop body
LE: loop exit
PB: predicated region body
PF: predicated region fallthrough
CT: control target
= control target key end

     0   :  { %6 = vsyncpa [#allocation3], 0  ;;  %s1410_s0 = inlined_call_operand.hbm [shape: f32[2,4,16,16], index: 0, kind: input, shape index: {}]   ;;  %s1411_s1 = inlined_call_operand.vmem [shape: f32[2,4,5,5], index: 1, kind: output, shape index: {}]  }
   0x1   :  { %8 = vsyncpa [#allocation3 + $0x1], 0  ;;  %s1097_s6 = smov 0   ;;  %s1099_s7 = smov 0  }
   0x2   :  { %s1101_s8 = smov 0   ;;  %s1103_s9 = smov 0  }
   0x3   :  { %s1105_s10 = smov 0   ;;  %s1107_s11 = smov 0  }
   0x4 LB: > { %s907_s12 = sadd.s32 4294967295, %s1075_s11   ;;  %s33_s13 = sadd.s32 1, %s1071_s10  ;;  %s1075_s11 = sphi %s1107_s11, %s14_s11   ;;  %s1071_s10 = sphi %s1105_s10, %s1419_s10   ;;  %s1067_s9 = sphi %s1103_s9, %s1418_s9   ;;  %s1063_s8 = sphi %s1101_s8, %s1417_s8   ;;  %s1059_s7 = sphi %s1099_s7, %s1416_s7   ;;  %s1055_s6 = sphi %s1097_s6, %s1415_s6  }
   0x5   : > { %p35_p0 = scmp.ge.s32.totalorder %s33_s13, 2  ;;  %s44_s14 = sadd.s32 1, %s1063_s8 }
   0x6   : > { %p51_p1 = scmp.ne.s32.totalorder %s1063_s8, %s1059_s7  ;;  %p52_p2 = scmp.eq.s32.totalorder %s1075_s11, 0 }
   0x7   : > { %s1421_s13 = smov (%p35_p0, %s33_s13), 0  ;;  %p57_p4 = scmp.ne.s32.totalorder %s1059_s7, %s1055_s6 }
   0x8   : > { %p1133_p3 = por %p52_p2, %p51_p1  ;;  %s37_s16 = ssub.s32 %s1071_s10, %s1421_s13 }
   0x9   : > { %p58_p5 = scmp.eq.s32.totalorder %s907_s12, 0  ;;  %p42_p6 = scmp.eq.s32.totalorder %s37_s16, 0 }
   0xa   : > { %p939_p8 = scmp.lt.s32.totalorder %s1075_s11, 2  ;;  %s111_s19 = sand.u32 1, %s1063_s8  }
   0xb   : > { %p1140_p7 = por %p58_p5, %p57_p4  ;;  %s931_s20 = sshll.u32 %s1071_s10, 10 }
   0xc   : > { %s1146_s18 = scalar_select %p42_p6, %s1063_s8, %s44_s14  }
   0xd   : > { %s911_s21 = sshll.u32 %s111_s19, 6  ;;  %s126_s24 = scalar_lea.hbm %s1410_s0, %s931_s20 }
   0xe   : > { %s115_s25 = scalar_lea.vmem [#allocation2], %s911_s21  ;;  %p1155_p9 = pnand %p939_p8, %p1133_p3 }
   0xf   : > { %s127_s26 = sshll.u32 %s115_s25, 4  ;;  %s112_s28 = scalar_lea.sflag [#allocation3], %s111_s19  ;;  %s128_s26 = int_to_ptr.vmem [resolvable:$true] %s127_s26 }
  0x10   : > { %p999_p10 = pneg %p1155_p9  ;;  %s1010_s29 = scalar_lea.vmem %s128_s26, 1024 }
  0x11   : > { %p1011_p11 = scmp.ne.s32.totalorder %s128_s26, %s1010_s29  ;;  %s1077_s30 = smov [#allocation2]  }
  0x12   : > { %s1015_s2 = sshll.u32 %s1077_s30, 4  ;;  %s1016_s2 = int_to_ptr.vmem [resolvable:$false] %s1015_s2 }
  0x13   : > { %p1013_p12 = pnand %p1011_p11, %p999_p10  ;;  %s1017_s3 = scalar_lea.vmem %s1016_s2, 2048 }
  0x14   : > { %p1018_p0 = scmp.lt.s32.totalorder %s128_s26, %s1016_s2  ;;  %p1019_p1 = scmp.lt.s32.totalorder %s1017_s3, %s1010_s29 }
  0x15   : > { %p1014_p13 = pneg %p1013_p12 }
  0x16   : > { %p1020_p2 = por %p1019_p1, %p1018_p0 }
  0x18   : > { %p1021_p3 = pnand %p1020_p2, %p1014_p13 }
  0x1a   : > { %1024 = shalt.err (!%p1021_p3)
}
  0x1b   : > { %s1078_s4 = smov 128   ;;  %s1079_s5 = smov 8  }
  0x1c   : > { %938 = dma.hbm_to_vmem [thread:$0]  (!%p1155_p9), %s126_s24, 1024, %s128_s26, %s112_s28, %s1078_s4, %s1078_s4, %s1079_s5  }
  0x1d   : > { %p914_p4 = scmp.ge.s32.totalorder %s1075_s11, 1  ;;  %p135_p5 = scmp.lt.s32.totalorder %s1075_s11, 3 }
  0x1f   : > { %p136_p6 = pnand %p914_p4, %p135_p5 }
  0x20   : > { %s141_s6 = sand.u32 (!%p136_p6), 1, %s1059_s7  }
  0x21   : > { %139 = sbr.rel (%p136_p6) target bundleno = 374 (0x176), region = 24  ;;  %s915_s12 = sshll.u32 (!%p136_p6), %s141_s6, 6 }
  0x22   : > { %s142_s14 = scalar_lea.sflag (!%p136_p6), [#allocation3], %s141_s6  ;;  %s145_s15 = scalar_lea.vmem (!%p136_p6), [#allocation2], %s915_s12 }
  0x26   : > { %1050 = dma.done.wait (%p1140_p7), %s142_s14, 1024  }
  0x27   : > { %1052 = vsyncadd (%p1140_p7), %s142_s14, 4294966272  ;;  %v919_v0 = vld [vmem:[%s145_s15 + $0x20] ss:$3 sm:$0x1f]  ;;  %s1080_s16 = smov 125   ;;  %s1081_s17 = smov 122   ;;  %v274_v28 = vlaneseq }
  0x28   : > { %v923_v1 = vld [vmem:[%s145_s15 + $0x21] ss:$3 sm:$0x1f]  ;;  %v927_v3 = vld [vmem:[%s145_s15 + $0x22] ss:$3 sm:$0x1f] }
  0x29   : > { %v203_v2 = vmax.f32 %v919_v0, %v923_v1  ;;  %v186_v4 = vld [vmem:[%s145_s15] ss:$3 sm:$0x1f]  ;;  %v921_v5 = vld [vmem:[%s145_s15 + $0x1] ss:$3 sm:$0x1f] }
  0x2a   : > { %v925_v6 = vld [vmem:[%s145_s15 + $0x2] ss:$3 sm:$0x1f]  ;;  %v201_v8 = vmax.f32 %v186_v4, %v921_v5  ;;  %v920_v9 = vld [vmem:[%s145_s15 + $0x30] ss:$3 sm:$0x1f] }
  0x2b   : > { %v1170_v7 = vmax.f32 %v203_v2, %v927_v3  ;;  %v924_v10 = vld [vmem:[%s145_s15 + $0x31] ss:$3 sm:$0x1f]  ;;  %v928_v12 = vld [vmem:[%s145_s15 + $0x32] ss:$3 sm:$0x1f] }
  0x2c   : > { %v204_v11 = vmax.f32 %v920_v9, %v924_v10  ;;  %v918_v13 = vld [vmem:[%s145_s15 + $0x10] ss:$3 sm:$0x1f]  ;;  %v1173_v14 = vmax.f32 %v201_v8, %v925_v6  ;;  %v922_v15 = vld [vmem:[%s145_s15 + $0x11] ss:$3 sm:$0x1f] }
  0x2d   : > { %225 = vrot.lane.b32.xlu1 %v1170_v7, %s1080_s16  ;;  %v926_v16 = vld [vmem:[%s145_s15 + $0x12] ss:$3 sm:$0x1f]  ;;  %v202_v18 = vmax.f32 %v918_v13, %v922_v15  ;;  %s1082_s19 = smov 119   ;;  %s1083_s20 = smov 116   ;;  %v1211_v32 = vshrl.u32 %v274_v28, 7 }
  0x2e   : > { %v1175_v17 = vmax.f32 %v204_v11, %v928_v12  ;;  %221 = vrot.lane.b32.xlu0 %v1173_v14, %s1080_s16  ;;  %v1084_v26 = vmov 1983009808   ;;  %v1085_v35 = vmov 1934713408   ;;  %v1086_v13 = vmov 0.0   ;;  %p174_p7 = scmp.lt.s32.totalorder %s1067_s9, 1 }
  0x2f   : > { %v1178_v19 = vmax.f32 %v202_v18, %v926_v16  ;;  %v272_v27 = vunpack.c.l.s4 %v1084_v26  ;;  %v311_v36 = vunpack.c.l.s4 %v1085_v35  ;;  %vm605_vm0 = vcmask 20480  }
  0x30   : > { %s1423_s9 = smov (!%p174_p7, %s1067_s9), 1  ;;  %vm768_vm1 = vcmask 1041409   ;;  %vm770_vm2 = vcmask 1042434   ;;  %vm772_vm3 = vcmask 1043459   ;;  %vm774_vm4 = vcmask 1044484  }
  0x31   : > { %227 = vrot.lane.b32.xlu1 %v1175_v17, %s1080_s16  ;;  %v273_v31 = vunpack.c.0.s8 %v272_v27  ;;  %v312_v45 = vunpack.c.0.s8 %v311_v36  ;;  %s932_s21 = sshll.u32 %s1423_s9, 5  ;;  %vm792_vm5 = vcmask 36864  }
  0x32   : > { %223 = vrot.lane.b32.xlu0 %v1178_v19, %s1080_s16  ;;  %s1368_s24 = scalar_lea.vmem %s1411_s1, %s932_s21 }
  0x33   : > { %v1220_v38 = vsub.s32 %v273_v31, %v1211_v32  ;;  %v1252_v56 = vsub.s32 %v312_v45, %v1211_v32 }
  0x35   : > { %235 = vrot.lane.b32.xlu1 %v1178_v19, %s1081_s17 }
  0x36   : > { %233 = vrot.lane.b32.xlu0 %v1173_v14, %s1081_s17 }
  0x39   : > { %239 = vrot.lane.b32.xlu1 %v1175_v17, %s1081_s17 }
  0x3a   : > { %237 = vrot.lane.b32.xlu0 %v1170_v7, %s1081_s17 }
  0x3d   : > { %247 = vrot.lane.b32.xlu1 %v1178_v19, %s1082_s19 }
  0x3e   : > { %245 = vrot.lane.b32.xlu0 %v1173_v14, %s1082_s19 }
  0x41   : > { %251 = vrot.lane.b32.xlu1 %v1175_v17, %s1082_s19 }
  0x42   : > { %249 = vrot.lane.b32.xlu0 %v1170_v7, %s1082_s19 }
  0x45   : > { %259 = vrot.lane.b32.xlu1 %v1178_v19, %s1083_s20 }
  0x46   : > { %257 = vrot.lane.b32.xlu0 %v1173_v14, %s1083_s20 }
  0x49   : > { %263 = vrot.lane.b32.xlu1 %v1175_v17, %s1083_s20 }
  0x4a   : > { %261 = vrot.lane.b32.xlu0 %v1170_v7, %s1083_s20 }
  0x9f   : > { %v1194_v20 = vpop.permute.xlu1 %225 }
  0xa0   : > { %v1196_v21 = vpop.permute.xlu0 %221 }
  0xa3   : > { %v1198_v22 = vpop.permute.xlu1 %227 }
  0xa4   : > { %v1200_v23 = vpop.permute.xlu0 %223 }
  0xa7   : > { %v1202_v24 = vpop.permute.xlu1 %235 }
  0xa8   : > { %v1204_v25 = vpop.permute.xlu0 %233  ;;  %v353_v42 = vcombine.low %v1178_v19, %v1202_v24 }
  0xa9   : > { %v269_v39 = vcombine.low %v1173_v14, %v1204_v25 }
  0xaa   : > { %v1249_v54 = vrot.slane %v353_v42, %v1220_v38 }
  0xab   : > { %v1206_v29 = vpop.permute.xlu1 %239  ;;  %v277_v48 = vrot.slane %v269_v39, %v1220_v38 }
  0xac   : > { %v1208_v30 = vpop.permute.xlu0 %237  ;;  %v521_v52 = vcombine.low %v1175_v17, %v1206_v29 }
  0xad   : > { %v437_v46 = vcombine.low %v1170_v7, %v1208_v30 }
  0xae   : > { %v1269_v0 = vrot.slane %v521_v52, %v1220_v38 }
  0xaf   : > { %v1213_v33 = vpop.permute.xlu1 %247  ;;  %v445_v59 = vrot.slane %v437_v46, %v1220_v38 }
  0xb0   : > { %v1215_v34 = vpop.permute.xlu0 %245  ;;  %v369_v40 = vcombine.low %v1200_v23, %v1213_v33 }
  0xb1   : > { %v285_v37 = vcombine.low %v1196_v21, %v1215_v34 }
  0xb2   : > { %v1239_v49 = vrot.slane %v369_v40, %v1220_v38 }
  0xb3   : > { %v1226_v41 = vpop.permute.xlu1 %251  ;;  %v293_v43 = vrot.slane %v285_v37, %v1220_v38 }
  0xb4   : > { %v1231_v44 = vpop.permute.xlu0 %249  ;;  %v537_v50 = vcombine.low %v1198_v22, %v1226_v41  ;;  %v392_v60 = vcombine.low %v1249_v54, %v1239_v49 }
  0xb5   : > { %v453_v47 = vcombine.low %v1194_v20, %v1231_v44  ;;  %v308_v55 = vcombine.low %v277_v48, %v293_v43  ;;  %v309_v37 = vcombine.high %v277_v48, %v293_v43 }
  0xb6   : > { %v1262_v61 = vrot.slane %v537_v50, %v1220_v38  ;;  %v400_v12 = vrot.slane %v392_v60, %v1252_v56 }
  0xb7   : > { %v1243_v51 = vpop.permute.xlu1 %259  ;;  %v461_v53 = vrot.slane %v453_v47, %v1220_v38  ;;  %v316_v6 = vrot.slane %v308_v55, %v1252_v56  ;;  %v323_v55 = vrot.slane %v309_v37, %v1252_v56 }
  0xb8   : > { %v391_v57 = vrot.slane %v1243_v51, %v1220_v38  ;;  %v1256_v58 = vpop.permute.xlu0 %257  ;;  %v560_v9 = vcombine.low %v1269_v0, %v1262_v61 }
  0xb9   : > { %v307_v62 = vrot.slane %v1256_v58, %v1220_v38  ;;  %v476_v1 = vcombine.low %v445_v59, %v461_v53  ;;  %v477_v52 = vcombine.high %v445_v59, %v461_v53  ;;  %v286_v53 = vcombine.high %v1196_v21, %v1215_v34 }
  0xba   : > { %v423_v2 = vrot.slane %v391_v57, %v1252_v56  ;;  %v568_v39 = vrot.slane %v560_v9, %v1252_v56  ;;  %v416_v60 = vcombine.high %v391_v57, %v1086_v13  ;;  %v270_v57 = vcombine.high %v1173_v14, %v1204_v25 }
  0xbb   : > { %v1266_v63 = vpop.permute.xlu1 %263  ;;  %v339_v3 = vrot.slane %v307_v62, %v1252_v56  ;;  %v332_v15 = vcombine.high %v307_v62, %v1086_v13  ;;  %v484_v18 = vrot.slane %v476_v1, %v1252_v56  ;;  %v491_v59 = vrot.slane %v477_v52, %v1252_v56 }
  0xbc   : > { %v559_v4 = vrot.slane %v1266_v63, %v1220_v38  ;;  %v1275_v5 = vpop.permute.xlu0 %261  ;;  %v432_v35 = vcombine.low %v400_v12, %v423_v2  ;;  %v433_v42 = vcombine.high %v400_v12, %v423_v2  ;;  %v430_v12 = vrot.slane %v416_v60, %v1252_v56 }
  0xbd   : > { %v475_v8 = vrot.slane %v1275_v5, %v1220_v38  ;;  %v349_v10 = vcombine.high %v316_v6, %v339_v3  ;;  %v348_v11 = vcombine.low %v316_v6, %v339_v3  ;;  %v346_v50 = vrot.slane %v332_v15, %v1252_v56 }
  0xbe   : > { %v591_v26 = vrot.slane %v559_v4, %v1252_v56  ;;  %v621_v46 = vsel %vm605_vm0, %v432_v35, -inf  ;;  %v624_v43 = vsel %vm605_vm0, %v433_v42, -inf  ;;  %v393_v3 = vcombine.high %v1249_v54, %v1239_v49 }
  0xbf   : > { %v507_v16 = vrot.slane %v475_v8, %v1252_v56  ;;  %v609_v27 = vsel %vm605_vm0, %v349_v10, -inf  ;;  %v606_v31 = vsel %vm605_vm0, %v348_v11, -inf  ;;  %v500_v45 = vcombine.high %v475_v8, %v1086_v13 }
  0xc0   : > { %610 = vmax.xlane.f32.xlu1 %v609_v27  ;;  %607 = vmax.xlane.f32.xlu0 %v606_v31  ;;  %v600_v47 = vcombine.low %v568_v39, %v591_v26  ;;  %v350_v1 = vcombine.low %v323_v55, %v346_v50  ;;  %v584_v6 = vcombine.high %v559_v4, %v1086_v13 }
  0xc1   : > { %v516_v36 = vcombine.low %v484_v18, %v507_v16  ;;  %v517_v62 = vcombine.high %v484_v18, %v507_v16  ;;  %v514_v2 = vrot.slane %v500_v45, %v1252_v56  ;;  %v601_v8 = vcombine.high %v568_v39, %v591_v26 }
  0xc2   : > { %v651_v48 = vsel %vm605_vm0, %v600_v47, -inf  ;;  %v612_v10 = vsel %vm605_vm0, %v350_v1, -inf  ;;  %v300_v49 = vrot.slane %v286_v53, %v1220_v38  ;;  %v561_v21 = vcombine.high %v1269_v0, %v1262_v61 }
  0xc3   : > { %v636_v40 = vsel %vm605_vm0, %v516_v36, -inf  ;;  %v639_v9 = vsel %vm605_vm0, %v517_v62, -inf  ;;  %v518_v11 = vcombine.low %v491_v59, %v514_v2  ;;  %v454_v14 = vcombine.high %v1194_v20, %v1231_v44 }
  0xc4   : > { %622 = vmax.xlane.f32.xlu0 %v621_v46  ;;  %637 = vmax.xlane.f32.xlu1 %v636_v40  ;;  %v407_v25 = vrot.slane %v393_v3, %v1252_v56  ;;  %v284_v34 = vrot.slane %v270_v57, %v1220_v38  ;;  %v438_v54 = vcombine.high %v1170_v7, %v1208_v30  ;;  %v654_v4 = vsel %vm605_vm0, %v601_v8, -inf }
  0xc5   : > { %v642_v15 = vsel %vm605_vm0, %v518_v11, -inf  ;;  %v351_v18 = vcombine.high %v323_v55, %v346_v50  ;;  %v598_v26 = vrot.slane %v584_v6, %v1252_v56  ;;  %v370_v20 = vcombine.high %v1200_v23, %v1213_v33 }
  0xc6   : > { %v434_v16 = vcombine.low %v407_v25, %v430_v12  ;;  %v324_v44 = vcombine.low %v284_v34, %v300_v49  ;;  %v468_v61 = vrot.slane %v454_v14, %v1220_v38  ;;  %v575_v0 = vrot.slane %v561_v21, %v1252_v56 }
  0xc7   : > { %v354_v7 = vcombine.high %v1178_v19, %v1202_v24  ;;  %v452_v30 = vrot.slane %v438_v54, %v1220_v38  ;;  %v347_v27 = vcombine.high %v1256_v58, %v1086_v13  ;;  %v615_v35 = vsel %vm605_vm0, %v351_v18, -inf }
  0xc8   : > { %625 = vmax.xlane.f32.xlu0 %v624_v43  ;;  %652 = vmax.xlane.f32.xlu1 %v651_v48  ;;  %v627_v31 = vsel %vm605_vm0, %v434_v16, -inf  ;;  %v602_v36 = vcombine.low %v575_v0, %v598_v26  ;;  %v519_v37 = vcombine.high %v491_v59, %v514_v2  ;;  %v384_v23 = vrot.slane %v370_v20, %v1220_v38 }
  0xc9   : > { %v538_v33 = vcombine.high %v1198_v22, %v1226_v41  ;;  %v492_v39 = vcombine.low %v452_v30, %v468_v61  ;;  %v331_v19 = vrot.slane %v324_v44, %v1252_v56  ;;  %v368_v24 = vrot.slane %v354_v7, %v1220_v38 }
  0xca   : > { %v522_v58 = vcombine.high %v1175_v17, %v1206_v29  ;;  %v515_v40 = vcombine.high %v1275_v5, %v1086_v13  ;;  %v657_v42 = vsel %vm605_vm0, %v602_v36, -inf  ;;  %v645_v45 = vsel %vm605_vm0, %v519_v37, -inf }
  0xcb   : > { %v435_v46 = vcombine.high %v407_v25, %v430_v12  ;;  %v352_v47 = vcombine.low %v331_v19, %v347_v27  ;;  %v408_v22 = vcombine.low %v368_v24, %v384_v23  ;;  %v552_v41 = vrot.slane %v538_v33, %v1220_v38 }
  0xcc   : > { %640 = vmax.xlane.f32.xlu0 %v639_v9  ;;  %613 = vmax.xlane.f32.xlu1 %v612_v10  ;;  %v499_v50 = vrot.slane %v492_v39, %v1252_v56  ;;  %v536_v52 = vrot.slane %v522_v58, %v1220_v38  ;;  %v431_v17 = vcombine.high %v1243_v51, %v1086_v13  ;;  %v687_v12 = vand.u32 127, %v274_v28 }
  0xcd   : > { %v630_v29 = vsel %vm605_vm0, %v435_v46, -inf  ;;  %v618_v5 = vsel %vm605_vm0, %v352_v47, -inf  ;;  %v603_v55 = vcombine.high %v575_v0, %v598_v26  ;;  %v415_v48 = vrot.slane %v408_v22, %v1252_v56 }
  0xce   : > { %v520_v60 = vcombine.low %v499_v50, %v515_v40  ;;  %v576_v43 = vcombine.low %v536_v52, %v552_v41  ;;  %v599_v62 = vcombine.high %v1266_v63, %v1086_v13  ;;  %v690_v21 = vsub.s32 %v687_v12, %v1211_v32 }
  0xcf   : > { %v660_v1 = vsel %vm605_vm0, %v603_v55, -inf  ;;  %v436_v2 = vcombine.low %v415_v48, %v431_v17 }
  0xd0   : > { %655 = vmax.xlane.f32.xlu0 %v654_v4  ;;  %643 = vmax.xlane.f32.xlu1 %v642_v15  ;;  %v648_v38 = vsel %vm605_vm0, %v520_v60, -inf  ;;  %v583_v51 = vrot.slane %v576_v43, %v1252_v56 }
  0xd1   : > { %v633_v3 = vsel %vm605_vm0, %v436_v2, -inf }
  0xd2   : > { %v604_v53 = vcombine.low %v583_v51, %v599_v62 }
  0xd4   : > { %628 = vmax.xlane.f32.xlu0 %v627_v31  ;;  %616 = vmax.xlane.f32.xlu1 %v615_v35  ;;  %v663_v59 = vsel %vm605_vm0, %v604_v53, -inf }
  0xd8   : > { %658 = vmax.xlane.f32.xlu0 %v657_v42  ;;  %646 = vmax.xlane.f32.xlu1 %v645_v45 }
  0xdc   : > { %631 = vmax.xlane.f32.xlu0 %v630_v29  ;;  %619 = vmax.xlane.f32.xlu1 %v618_v5 }
  0xe0   : > { %661 = vmax.xlane.f32.xlu0 %v660_v1  ;;  %649 = vmax.xlane.f32.xlu1 %v648_v38 }
  0xe4   : > { %634 = vmax.xlane.f32.xlu0 %v633_v3 }
  0xe8   : > { %664 = vmax.xlane.f32.xlu0 %v663_v59 }
 0x149   : > { %v611_v57 = vpop.xlane.xlu1 %610  ;;  %v608_v63 = vpop.xlane.xlu0 %607 }
 0x14a   : > { %v695_v34 = vrot.slane %v611_v57, %v690_v21  ;;  %v691_v54 = vrot.slane %v608_v63, %v690_v21 }
 0x14c   : > { %v769_v28 = vsel %vm768_vm1, %v695_v34, %v691_v54 }
 0x14d   : > { %v638_v13 = vpop.xlane.xlu1 %637  ;;  %v623_v6 = vpop.xlane.xlu0 %622 }
 0x14e   : > { %v731_v7 = vrot.slane %v638_v13, %v690_v21  ;;  %v711_v24 = vrot.slane %v623_v6, %v690_v21 }
 0x151   : > { %v653_v8 = vpop.xlane.xlu1 %652  ;;  %v626_v9 = vpop.xlane.xlu0 %625 }
 0x152   : > { %v715_v35 = vrot.slane %v626_v9, %v690_v21  ;;  %v751_v52 = vrot.slane %v653_v8, %v690_v21 }
 0x154   : > { %v776_v45 = vsel %vm768_vm1, %v715_v35, %v711_v24 }
 0x155   : > { %v614_v10 = vpop.xlane.xlu1 %613  ;;  %v641_v11 = vpop.xlane.xlu0 %640 }
 0x156   : > { %v699_v16 = vrot.slane %v614_v10, %v690_v21  ;;  %v735_v26 = vrot.slane %v641_v11, %v690_v21 }
 0x158   : > { %v771_v32 = vsel %vm770_vm2, %v699_v16, %v769_v28  ;;  %v780_v36 = vsel %vm768_vm1, %v735_v26, %v731_v7 }
 0x159   : > { %v644_v56 = vpop.xlane.xlu1 %643  ;;  %v656_v49 = vpop.xlane.xlu0 %655 }
 0x15a   : > { %v739_v61 = vrot.slane %v644_v56, %v690_v21  ;;  %v755_v46 = vrot.slane %v656_v49, %v690_v21 }
 0x15c   : > { %v781_v33 = vsel %vm770_vm2, %v739_v61, %v780_v36  ;;  %v784_v55 = vsel %vm768_vm1, %v755_v46, %v751_v52 }
 0x15d   : > { %v617_v14 = vpop.xlane.xlu1 %616  ;;  %v629_v25 = vpop.xlane.xlu0 %628 }
 0x15e   : > { %v703_v18 = vrot.slane %v617_v14, %v690_v21  ;;  %v719_v39 = vrot.slane %v629_v25, %v690_v21 }
 0x160   : > { %v773_v30 = vsel %vm772_vm3, %v703_v18, %v771_v32  ;;  %v777_v22 = vsel %vm770_vm2, %v719_v39, %v776_v45 }
 0x161   : > { %v647_v4 = vpop.xlane.xlu1 %646  ;;  %v659_v15 = vpop.xlane.xlu0 %658 }
 0x162   : > { %v743_v27 = vrot.slane %v647_v4, %v690_v21  ;;  %v759_v41 = vrot.slane %v659_v15, %v690_v21 }
 0x164   : > { %v782_v58 = vsel %vm772_vm3, %v743_v27, %v781_v33  ;;  %v785_v43 = vsel %vm770_vm2, %v759_v41, %v784_v55 }
 0x165   : > { %v620_v20 = vpop.xlane.xlu1 %619  ;;  %v632_v44 = vpop.xlane.xlu0 %631 }
 0x166   : > { %v707_v0 = vrot.slane %v620_v20, %v690_v21  ;;  %v723_v40 = vrot.slane %v632_v44, %v690_v21 }
 0x168   : > { %v775_v31 = vsel %vm774_vm4, %v707_v0, %v773_v30  ;;  %v778_v17 = vsel %vm772_vm3, %v723_v40, %v777_v22 }
 0x169   : > { %793 = vst.msk [vmem:[%s1368_s24] sm:$0x1f] %vm792_vm5, %v775_v31  ;;  %v650_v37 = vpop.xlane.xlu1 %649  ;;  %v662_v23 = vpop.xlane.xlu0 %661 }
 0x16a   : > { %v747_v19 = vrot.slane %v650_v37, %v690_v21  ;;  %v763_v29 = vrot.slane %v662_v23, %v690_v21 }
 0x16c   : > { %v783_v42 = vsel %vm774_vm4, %v747_v19, %v782_v58  ;;  %v786_v62 = vsel %vm772_vm3, %v763_v29, %v785_v43 }
 0x16d   : > { %795 = vst.msk [vmem:[%s1368_s24 + $0x10] sm:$0x1f] %vm792_vm5, %v783_v42  ;;  %v635_v47 = vpop.xlane.xlu0 %634 }
 0x16e   : > { %v727_v50 = vrot.slane %v635_v47, %v690_v21 }
 0x170   : > { %v779_v5 = vsel %vm774_vm4, %v727_v50, %v778_v17 }
 0x171   : > { %794 = vst.msk [vmem:[%s1368_s24 + $0x8] sm:$0x1f] %vm792_vm5, %v779_v5  ;;  %v665_v60 = vpop.xlane.xlu0 %664 }
 0x172   : > { %v767_v48 = vrot.slane %v665_v60, %v690_v21 }
 0x174   : > { %v787_v1 = vsel %vm774_vm4, %v767_v48, %v786_v62 }
 0x175   : > { %796 = vst.msk [vmem:[%s1368_s24 + $0x18] sm:$0x1f] %vm792_vm5, %v787_v1 }
 0x176 PF: > { %s14_s11 = sadd.s32 1, %s1075_s11   ;;  %s1415_s6 = smov %s1059_s7 }
 0x177   : > { %p11_p8 = scmp.ge.s32.totalorder %s14_s11, 4   ;;  %s1416_s7 = smov %s1063_s8 }
 0x178   : > { %s1417_s8 = smov %s1146_s18  ;;  %s1418_s9 = smov %s1071_s10 }
 0x179   : > { %s1419_s10 = smov %s1421_s13  ;;  %13 = sbr.rel (!%p11_p8) target bundleno = 4 (0x4), region = 75 }
 0x17e   :  { %833 = vsyncpa [#allocation3], 1 }
 0x17f   :  { %835 = vsyncpa [#allocation3 + $0x1], 1 }

</bundles_post_ra>
